<compile_context>
chip_gen: v7x
topology: tpu7x:2x2x1
jax: 0.10.0
libtpu: 0.0.40
codegen_flags: <defaults>
</compile_context>

<pallas_src>
import functools

import jax
import jax.numpy as jnp
from jax.experimental import pallas as pl
from jax.experimental.pallas import tpu as pltpu


# ---------------------------------------------------------------------------
# Pallas kernel 1: generator head (LayerNorm + gen_fc), SelectItem fused away.
# ---------------------------------------------------------------------------
def _gen_head_kernel(x_ref, g_ref, b_ref, w_ref, bias_ref, o_ref, *, eps):
    x = x_ref[...].astype(jnp.float32)                       # (tm, H)
    mean = jnp.mean(x, axis=-1, keepdims=True)
    xc = x - mean
    var = jnp.mean(xc * xc, axis=-1, keepdims=True)
    y = xc * jax.lax.rsqrt(var + eps) * g_ref[...] + b_ref[...]
    # TODO(synk): dropout is identity in eval mode; training-mode dropout would
    # use pltpu.prng_seed / pltpu.stateful_bernoulli here.
    out = jnp.dot(y, w_ref[...].astype(jnp.float32),
                  preferred_element_type=jnp.float32) + bias_ref[...]
    o_ref[...] = out.astype(o_ref.dtype)


def gen_head(x2d, gamma, beta, w, bias, *, eps=1e-5, tm=None):
    rows, h = x2d.shape
    z = w.shape[1]
    if tm is None:
        tm = rows if rows <= 256 else 256
    assert rows % tm == 0
    return pl.pallas_call(
        functools.partial(_gen_head_kernel, eps=eps),
        out_shape=jax.ShapeDtypeStruct((rows, z), x2d.dtype),
        grid=(rows // tm,),
        in_specs=[
            pl.BlockSpec((tm, h), lambda i: (i, 0)),
            pl.BlockSpec((1, h), lambda i: (0, 0)),
            pl.BlockSpec((1, h), lambda i: (0, 0)),
            pl.BlockSpec((h, z), lambda i: (0, 0)),
            pl.BlockSpec((1, z), lambda i: (0, 0)),
        ],
        out_specs=pl.BlockSpec((tm, z), lambda i: (i, 0)),
        compiler_params=pltpu.CompilerParams(dimension_semantics=("parallel",)),
    )(x2d, gamma.reshape(1, h), beta.reshape(1, h), w, bias.reshape(1, z))


# ---------------------------------------------------------------------------
# Pallas kernel 2: classifier head (mask-fill + max over seq + cls_fc).
# ---------------------------------------------------------------------------
def _cls_head_kernel(x_ref, m_ref, w_ref, bias_ref, o_ref):
    x = x_ref[...].astype(jnp.float32)          # (B, S, H)
    m = m_ref[...].astype(jnp.float32)          # (B, S, 1)
    masked = x * m + (1.0 - m) * (-1000000.0)
    pooled = jnp.max(masked, axis=1)            # (B, H)
    out = jnp.dot(pooled, w_ref[...].astype(jnp.float32),
                  preferred_element_type=jnp.float32) + bias_ref[...]
    o_ref[...] = out.astype(o_ref.dtype)


def cls_head(x, mask3, w, bias):
    bsz, s, h = x.shape
    c = w.shape[1]
    return pl.pallas_call(
        _cls_head_kernel,
        out_shape=jax.ShapeDtypeStruct((bsz, c), x.dtype),
        grid=(1,),
        in_specs=[
            pl.BlockSpec((bsz, s, h), lambda i: (0, 0, 0)),
            pl.BlockSpec((bsz, s, 1), lambda i: (0, 0, 0)),
            pl.BlockSpec((h, c), lambda i: (0, 0)),
            pl.BlockSpec((1, c), lambda i: (0, 0)),
        ],
        out_specs=pl.BlockSpec((bsz, c), lambda i: (0, 0)),
    )(x, mask3, w, bias.reshape(1, c))


# ---------------------------------------------------------------------------
# Non-Pallas pieces (recurrence / gather / sampling).
# ---------------------------------------------------------------------------
def _gru_cell(x_t, h, wi, wh, bi, bh):
    gi = x_t @ wi.T + bi
    gh = h @ wh.T + bh
    i_r, i_z, i_n = jnp.split(gi, 3, axis=-1)
    h_r, h_z, h_n = jnp.split(gh, 3, axis=-1)
    r = jax.nn.sigmoid(i_r + h_r)
    u = jax.nn.sigmoid(i_z + h_z)
    n = jnp.tanh(i_n + r * h_n)
    return (1.0 - u) * n + u * h


def bigru(x, p):
    """PyTorch-style bidirectional single-layer GRU (batch_first).

    Returns the (output, h_n) pair like nn.GRU.  SelectItem(0) on this tuple
    is a plain Python index -- zero HBM bytes, per the perf review.
    TODO(synk): the recurrence itself stays in lax.scan, not a Pallas kernel.
    """
    bsz = x.shape[0]
    hh = p["wi_f"].shape[0] // 3

    def run(seq, wi, wh, bi, bh):
        def step(h, xt):
            h2 = _gru_cell(xt, h, wi, wh, bi, bh)
            return h2, h2
        h0 = jnp.zeros((bsz, hh), x.dtype)
        _, ys = jax.lax.scan(step, h0, jnp.swapaxes(seq, 0, 1))
        return jnp.swapaxes(ys, 0, 1)

    out_f = run(x, p["wi_f"], p["wh_f"], p["bi_f"], p["bh_f"])
    out_b = run(x[:, ::-1], p["wi_b"], p["wh_b"], p["bi_b"], p["bh_b"])[:, ::-1]
    out = jnp.concatenate([out_f, out_b], axis=-1)
    h_n = jnp.stack([out_f[:, -1], out_b[:, 0]], axis=0)
    return out, h_n


def gumbel_softmax_hard(key, logits, tau=1.0):
    u = jax.random.uniform(key, logits.shape, minval=1e-6, maxval=1.0 - 1e-6)
    g = -jnp.log(-jnp.log(u))
    y_soft = jax.nn.softmax((logits + g) / tau, axis=-1)
    idx = jnp.argmax(y_soft, axis=-1)
    return jax.nn.one_hot(idx, logits.shape[-1], dtype=logits.dtype)


def reagr_forward(params, inputs, masks, key):
    """ReAGR.forward(inputs, masks)  (state=None path) -> (gen_logits, z, cls_logits)."""
    masks3 = masks[..., None].astype(jnp.float32)
    # Embedding lookup + mask: plain gather * mask; fuses under jit, no kernel needed.
    emb = jnp.take(params["emb"], inputs, axis=0) * masks3
    # generator = gen GRU -> SelectItem(0) -> LayerNorm -> Dropout -> gen_fc
    gen_out = bigru(emb, params["gen"])[0]            # SelectItem(0): zero-copy tuple index
    bsz, s, h = gen_out.shape
    gen_logits = gen_head(gen_out.reshape(bsz * s, h),
                          params["ln1_g"], params["ln1_b"],
                          params["gen_fc_w"], params["gen_fc_b"]).reshape(bsz, s, -1)
    z = gumbel_softmax_hard(key, gen_logits)
    cls_emb = emb * z[:, :, 1:2]
    cls_out = bigru(cls_emb, params["cls"])[0]
    cls_logits = cls_head(cls_out, masks3, params["cls_fc_w"], params["cls_fc_b"])
    return gen_logits, z, cls_logits


# Pure-JAX references for the two Pallas kernels (correctness checks only).
def gen_head_ref(x2d, gamma, beta, w, bias, eps=1e-5):
    mean = x2d.mean(-1, keepdims=True)
    var = ((x2d - mean) ** 2).mean(-1, keepdims=True)
    y = (x2d - mean) * jax.lax.rsqrt(var + eps) * gamma + beta
    return y @ w + bias


def cls_head_ref(x, mask3, w, bias):
    masked = x * mask3 + (1.0 - mask3) * (-1000000.0)
    return masked.max(axis=1) @ w + bias


if __name__ == "__main__":
    key = jax.random.PRNGKey(0)
    vocab, emb_dim, hidden, n_class = 50, 16, 32, 2
    bsz, seq = 2, 8
    hh = hidden // 2

    ks = jax.random.split(key, 8)

    def gru_params(k):
        kk = jax.random.split(k, 8)
        w = lambda kq, shape: 0.1 * jax.random.normal(kq, shape, jnp.float32)
        return dict(
            wi_f=w(kk[0], (3 * hh, emb_dim)), wh_f=w(kk[1], (3 * hh, hh)),
            bi_f=w(kk[2], (3 * hh,)), bh_f=w(kk[3], (3 * hh,)),
            wi_b=w(kk[4], (3 * hh, emb_dim)), wh_b=w(kk[5], (3 * hh, hh)),
            bi_b=w(kk[6], (3 * hh,)), bh_b=w(kk[7], (3 * hh,)),
        )

    params = dict(
        emb=0.1 * jax.random.normal(ks[0], (vocab, emb_dim), jnp.float32),
        gen=gru_params(ks[1]),
        cls=gru_params(ks[2]),
        ln1_g=jnp.ones((hidden,), jnp.float32),
        ln1_b=jnp.zeros((hidden,), jnp.float32),
        gen_fc_w=0.1 * jax.random.normal(ks[3], (hidden, 2), jnp.float32),
        gen_fc_b=jnp.zeros((2,), jnp.float32),
        cls_fc_w=0.1 * jax.random.normal(ks[4], (hidden, n_class), jnp.float32),
        cls_fc_b=jnp.zeros((n_class,), jnp.float32),
    )

    inputs = jax.random.randint(ks[5], (bsz, seq), 0, vocab, dtype=jnp.int32)
    masks = (jnp.arange(seq)[None, :] < jnp.array([[seq], [seq - 2]])).astype(jnp.float32)
    zkey = ks[6]

    # Run the full forward once (jitted) and block on it.
    fwd = jax.jit(functools.partial(reagr_forward, params))
    gen_logits, z, cls_logits = jax.block_until_ready(fwd(inputs, masks, zkey))
    assert gen_logits.shape == (bsz, seq, 2)
    assert z.shape == (bsz, seq, 2)
    assert cls_logits.shape == (bsz, n_class)

    # Validate both Pallas head kernels against pure-JAX refs on identical inputs.
    masks3 = masks[..., None]
    emb = jnp.take(params["emb"], inputs, axis=0) * masks3
    gen_out = bigru(emb, params["gen"])[0]
    x2d = gen_out.reshape(bsz * seq, hidden)
    gl_k = gen_head(x2d, params["ln1_g"], params["ln1_b"],
                    params["gen_fc_w"], params["gen_fc_b"])
    gl_r = gen_head_ref(x2d, params["ln1_g"], params["ln1_b"],
                        params["gen_fc_w"], params["gen_fc_b"])
    assert bool(jnp.allclose(gl_k, gl_r, atol=2e-3, rtol=2e-3)), "gen head mismatch"

    cls_emb = emb * z[:, :, 1:2]
    cls_out = bigru(cls_emb, params["cls"])[0]
    cl_k = cls_head(cls_out, masks3, params["cls_fc_w"], params["cls_fc_b"])
    cl_r = cls_head_ref(cls_out, masks3, params["cls_fc_w"], params["cls_fc_b"])
    assert bool(jnp.allclose(cl_k, cl_r, atol=2e-3, rtol=2e-3)), "cls head mismatch"

    print("KERNEL_OK")
</pallas_src>

<mosaic_0001>
module attributes {stable_mosaic.version = 11 : i64} {
  func.func @_gen_head_kernel(%arg0: i32, %arg1: memref<16x32xf32, #tpu.memory_space<vmem>>, %arg2: memref<1x32xf32, #tpu.memory_space<vmem>>, %arg3: memref<1x32xf32, #tpu.memory_space<vmem>>, %arg4: memref<32x2xf32, #tpu.memory_space<vmem>>, %arg5: memref<1x2xf32, #tpu.memory_space<vmem>>, %arg6: memref<16x2xf32, #tpu.memory_space<vmem>>) attributes {dimension_semantics = [#tpu.dimension_semantics<parallel>], iteration_bounds = array<i64: 1>, scalar_prefetch = 0 : i64, scratch_operands = 0 : i64, tpu.core_type = #tpu.core_type<tc>, window_params = [{transform_indices = @transform_0, window_bounds = array<i64: 16, 32>}, {pipeline_mode = #tpu.pipeline_mode<synchronous>, transform_indices = @transform_1, window_bounds = array<i64: 1, 32>}, {pipeline_mode = #tpu.pipeline_mode<synchronous>, transform_indices = @transform_2, window_bounds = array<i64: 1, 32>}, {pipeline_mode = #tpu.pipeline_mode<synchronous>, transform_indices = @transform_3, window_bounds = array<i64: 32, 2>}, {pipeline_mode = #tpu.pipeline_mode<synchronous>, transform_indices = @transform_4, window_bounds = array<i64: 1, 2>}, {transform_indices = @transform_5, window_bounds = array<i64: 16, 2>}]} {
    %c0 = arith.constant 0 : index
    %c0_0 = arith.constant 0 : index
    %0 = vector.load %arg1[%c0, %c0_0] : memref<16x32xf32, #tpu.memory_space<vmem>>, vector<16x32xf32>
    %cst = arith.constant dense<0.000000e+00> : vector<16xf32>
    %1 = vector.multi_reduction <add>, %0, %cst [1] : vector<16x32xf32> to vector<16xf32>
    %2 = vector.shape_cast %1 : vector<16xf32> to vector<16x1xf32>
    %cst_1 = arith.constant 3.200000e+01 : f32
    %3 = vector.broadcast %cst_1 : f32 to vector<16x1xf32>
    %4 = arith.divf %2, %3 : vector<16x1xf32>
    %5 = vector.broadcast %4 : vector<16x1xf32> to vector<16x32xf32>
    %6 = arith.subf %0, %5 : vector<16x32xf32>
    %7 = arith.mulf %6, %6 : vector<16x32xf32>
    %cst_2 = arith.constant dense<0.000000e+00> : vector<16xf32>
    %8 = vector.multi_reduction <add>, %7, %cst_2 [1] : vector<16x32xf32> to vector<16xf32>
    %9 = vector.shape_cast %8 : vector<16xf32> to vector<16x1xf32>
    %cst_3 = arith.constant 3.200000e+01 : f32
    %10 = vector.broadcast %cst_3 : f32 to vector<16x1xf32>
    %11 = arith.divf %9, %10 : vector<16x1xf32>
    %cst_4 = arith.constant 9.99999974E-6 : f32
    %12 = vector.broadcast %cst_4 : f32 to vector<16x1xf32>
    %13 = arith.addf %11, %12 : vector<16x1xf32>
    %14 = math.rsqrt %13 : vector<16x1xf32>
    %15 = vector.broadcast %14 : vector<16x1xf32> to vector<16x32xf32>
    %16 = arith.mulf %6, %15 : vector<16x32xf32>
    %c0_5 = arith.constant 0 : index
    %c0_6 = arith.constant 0 : index
    %17 = vector.load %arg2[%c0_5, %c0_6] : memref<1x32xf32, #tpu.memory_space<vmem>>, vector<1x32xf32>
    %18 = vector.broadcast %17 : vector<1x32xf32> to vector<16x32xf32>
    %19 = arith.mulf %16, %18 : vector<16x32xf32>
    %c0_7 = arith.constant 0 : index
    %c0_8 = arith.constant 0 : index
    %20 = vector.load %arg3[%c0_7, %c0_8] : memref<1x32xf32, #tpu.memory_space<vmem>>, vector<1x32xf32>
    %21 = vector.broadcast %20 : vector<1x32xf32> to vector<16x32xf32>
    %22 = arith.addf %19, %21 : vector<16x32xf32>
    %c0_9 = arith.constant 0 : index
    %c0_10 = arith.constant 0 : index
    %23 = vector.load %arg4[%c0_9, %c0_10] : memref<32x2xf32, #tpu.memory_space<vmem>>, vector<32x2xf32>
    %cst_11 = arith.constant dense<0.000000e+00> : vector<16x2xf32>
    %24 = tpu.matmul %22, %23, %cst_11 {dimension_numbers = #tpu.dot_dimension_numbers<[1], [0], [0], [1], [0, 0, 1, 1], [], []>} : vector<16x32xf32>, vector<32x2xf32>, vector<16x2xf32> -> vector<16x2xf32>
    %c0_12 = arith.constant 0 : index
    %c0_13 = arith.constant 0 : index
    %25 = vector.load %arg5[%c0_12, %c0_13] : memref<1x2xf32, #tpu.memory_space<vmem>>, vector<1x2xf32>
    %26 = vector.broadcast %25 : vector<1x2xf32> to vector<16x2xf32>
    %27 = arith.addf %24, %26 : vector<16x2xf32>
    %c0_14 = arith.constant 0 : index
    %c0_15 = arith.constant 0 : index
    %28 = vector.load %arg6[%c0_14, %c0_15] : memref<16x2xf32, #tpu.memory_space<vmem>>, vector<16x2xf32>
    tpu.vector_store %arg6[%c0_14, %c0_15], %27 {strides = array<i32>} : memref<16x2xf32, #tpu.memory_space<vmem>>, vector<16x2xf32>,
    return
  }
  func.func @transform_0(%arg0: i32) -> (i32, i32) {
    %c0_i32 = arith.constant 0 : i32
    %c0_i32_0 = arith.constant 0 : i32
    return %arg0, %c0_i32 : i32, i32
  }
  func.func @transform_1(%arg0: i32) -> (i32, i32) {
    %c0_i32 = arith.constant 0 : i32
    %c0_i32_0 = arith.constant 0 : i32
    %c0_i32_1 = arith.constant 0 : i32
    return %c0_i32, %c0_i32_0 : i32, i32
  }
  func.func @transform_2(%arg0: i32) -> (i32, i32) {
    %c0_i32 = arith.constant 0 : i32
    %c0_i32_0 = arith.constant 0 : i32
    %c0_i32_1 = arith.constant 0 : i32
    return %c0_i32, %c0_i32_0 : i32, i32
  }
  func.func @transform_3(%arg0: i32) -> (i32, i32) {
    %c0_i32 = arith.constant 0 : i32
    %c0_i32_0 = arith.constant 0 : i32
    %c0_i32_1 = arith.constant 0 : i32
    return %c0_i32, %c0_i32_0 : i32, i32
  }
  func.func @transform_4(%arg0: i32) -> (i32, i32) {
    %c0_i32 = arith.constant 0 : i32
    %c0_i32_0 = arith.constant 0 : i32
    %c0_i32_1 = arith.constant 0 : i32
    return %c0_i32, %c0_i32_0 : i32, i32
  }
  func.func @transform_5(%arg0: i32) -> (i32, i32) {
    %c0_i32 = arith.constant 0 : i32
    %c0_i32_0 = arith.constant 0 : i32
    return %arg0, %c0_i32 : i32, i32
  }
}

module attributes {stable_mosaic.version = 11 : i64} {
  func.func @_cls_head_kernel(%arg0: i32, %arg1: memref<2x8x32xf32, #tpu.memory_space<vmem>>, %arg2: memref<2x8x1xf32, #tpu.memory_space<vmem>>, %arg3: memref<32x2xf32, #tpu.memory_space<vmem>>, %arg4: memref<1x2xf32, #tpu.memory_space<vmem>>, %arg5: memref<2x2xf32, #tpu.memory_space<vmem>>) attributes {dimension_semantics = [#tpu.dimension_semantics<arbitrary>], iteration_bounds = array<i64: 1>, scalar_prefetch = 0 : i64, scratch_operands = 0 : i64, tpu.core_type = #tpu.core_type<tc>, window_params = [{pipeline_mode = #tpu.pipeline_mode<synchronous>, transform_indices = @transform_0, window_bounds = array<i64: 2, 8, 32>}, {pipeline_mode = #tpu.pipeline_mode<synchronous>, transform_indices = @transform_1, window_bounds = array<i64: 2, 8, 1>}, {pipeline_mode = #tpu.pipeline_mode<synchronous>, transform_indices = @transform_2, window_bounds = array<i64: 32, 2>}, {pipeline_mode = #tpu.pipeline_mode<synchronous>, transform_indices = @transform_3, window_bounds = array<i64: 1, 2>}, {pipeline_mode = #tpu.pipeline_mode<synchronous>, transform_indices = @transform_4, window_bounds = array<i64: 2, 2>}]} {
    %c0 = arith.constant 0 : index
    %c0_0 = arith.constant 0 : index
    %c0_1 = arith.constant 0 : index
    %0 = vector.load %arg1[%c0, %c0_0, %c0_1] : memref<2x8x32xf32, #tpu.memory_space<vmem>>, vector<2x8x32xf32>
    %c0_2 = arith.constant 0 : index
    %c0_3 = arith.constant 0 : index
    %c0_4 = arith.constant 0 : index
    %1 = vector.load %arg2[%c0_2, %c0_3, %c0_4] : memref<2x8x1xf32, #tpu.memory_space<vmem>>, vector<2x8x1xf32>
    %2 = vector.broadcast %1 : vector<2x8x1xf32> to vector<2x8x32xf32>
    %3 = arith.mulf %0, %2 : vector<2x8x32xf32>
    %cst = arith.constant 1.000000e+00 : f32
    %4 = vector.broadcast %cst : f32 to vector<2x8x1xf32>
    %5 = arith.subf %4, %1 : vector<2x8x1xf32>
    %cst_5 = arith.constant -1.000000e+06 : f32
    %6 = vector.broadcast %cst_5 : f32 to vector<2x8x1xf32>
    %7 = arith.mulf %5, %6 : vector<2x8x1xf32>
    %8 = vector.broadcast %7 : vector<2x8x1xf32> to vector<2x8x32xf32>
    %9 = arith.addf %3, %8 : vector<2x8x32xf32>
    %cst_6 = arith.constant dense<0xFF800000> : vector<2x32xf32>
    %10 = vector.multi_reduction <maximumf>, %9, %cst_6 [1] : vector<2x8x32xf32> to vector<2x32xf32>
    %c0_7 = arith.constant 0 : index
    %c0_8 = arith.constant 0 : index
    %11 = vector.load %arg3[%c0_7, %c0_8] : memref<32x2xf32, #tpu.memory_space<vmem>>, vector<32x2xf32>
    %cst_9 = arith.constant dense<0.000000e+00> : vector<2x2xf32>
    %12 = tpu.matmul %10, %11, %cst_9 {dimension_numbers = #tpu.dot_dimension_numbers<[1], [0], [0], [1], [0, 0, 1, 1], [], []>} : vector<2x32xf32>, vector<32x2xf32>, vector<2x2xf32> -> vector<2x2xf32>
    %c0_10 = arith.constant 0 : index
    %c0_11 = arith.constant 0 : index
    %13 = vector.load %arg4[%c0_10, %c0_11] : memref<1x2xf32, #tpu.memory_space<vmem>>, vector<1x2xf32>
    %14 = vector.broadcast %13 : vector<1x2xf32> to vector<2x2xf32>
    %15 = arith.addf %12, %14 : vector<2x2xf32>
    %c0_12 = arith.constant 0 : index
    %c0_13 = arith.constant 0 : index
    %16 = vector.load %arg5[%c0_12, %c0_13] : memref<2x2xf32, #tpu.memory_space<vmem>>, vector<2x2xf32>
    tpu.vector_store %arg5[%c0_12, %c0_13], %15 {strides = array<i32>} : memref<2x2xf32, #tpu.memory_space<vmem>>, vector<2x2xf32>,
    return
  }
  func.func @transform_0(%arg0: i32) -> (i32, i32, i32) {
    %c0_i32 = arith.constant 0 : i32
    %c0_i32_0 = arith.constant 0 : i32
    %c0_i32_1 = arith.constant 0 : i32
    %c0_i32_2 = arith.constant 0 : i32
    return %c0_i32, %c0_i32_0, %c0_i32_1 : i32, i32, i32
  }
  func.func @transform_1(%arg0: i32) -> (i32, i32, i32) {
    %c0_i32 = arith.constant 0 : i32
    %c0_i32_0 = arith.constant 0 : i32
    %c0_i32_1 = arith.constant 0 : i32
    %c0_i32_2 = arith.constant 0 : i32
    return %c0_i32, %c0_i32_0, %c0_i32_1 : i32, i32, i32
  }
  func.func @transform_2(%arg0: i32) -> (i32, i32) {
    %c0_i32 = arith.constant 0 : i32
    %c0_i32_0 = arith.constant 0 : i32
    %c0_i32_1 = arith.constant 0 : i32
    return %c0_i32, %c0_i32_0 : i32, i32
  }
  func.func @transform_3(%arg0: i32) -> (i32, i32) {
    %c0_i32 = arith.constant 0 : i32
    %c0_i32_0 = arith.constant 0 : i32
    %c0_i32_1 = arith.constant 0 : i32
    return %c0_i32, %c0_i32_0 : i32, i32
  }
  func.func @transform_4(%arg0: i32) -> (i32, i32) {
    %c0_i32 = arith.constant 0 : i32
    %c0_i32_0 = arith.constant 0 : i32
    %c0_i32_1 = arith.constant 0 : i32
    return %c0_i32, %c0_i32_0 : i32, i32
  }
}

</mosaic_0001>

<bundles_post_ra>
// kernel: custom-call.1
= control target key start
LH: loop header
LB: loop body
LE: loop exit
PB: predicated region body
PF: predicated region fallthrough
CT: control target
= control target key end

     0   :  { %s6_s0 = inlined_call_operand.vmem [shape: f32[2,16], index: 0, kind: output, shape index: {}]  }

// kernel: div.25
= control target key start
LH: loop header
LB: loop body
LE: loop exit
PB: predicated region body
PF: predicated region fallthrough
CT: control target
= control target key end

     0   :  { %vm7_vm0 = vcmask 64512   ;;  %s39_s0 = inlined_call_operand.vmem [shape: f32[16], index: 0, kind: input, shape index: {}]   ;;  %s40_s1 = inlined_call_operand.vmem [shape: f32[2,8], index: 1, kind: output, shape index: {}]  }
   0x1   :  { %v4_v0 = vld [vmem:[%s39_s0] sm:$0x1]  ;;  %s22_s0 = smov 120  }
   0x2   :  { %5 = vst [vmem:[#allocation1] sm:$0x1] %v4_v0 }
   0x9   :  { %v9_v1 = vld [vmem:[#allocation1] sm:$0x1]  }
   0xa   :  { %v6_v2 = vld [vmem:[#allocation1] sm:$0x1]   ;;  %10 = vrot.lane.b32.xlu0 %v9_v1, %s22_s0 }
   0xb   :  { %8 = vst.msk [vmem:[#allocation0] sm:$0x1] %vm7_vm0, %v6_v2  }
  0x7c   :  { %v11_v3 = vpop.permute.xlu0 %10  }
  0x7d   :  { %14 = vst.msk [vmem:[#allocation0 + $0x1] sm:$0x1] %vm7_vm0, %v11_v3  }
  0x84   :  { %v18_v4 = vld [vmem:[#allocation0] sm:$0x3] }
  0x85   :  { %20 = vst [vmem:[%s40_s1] sm:$0x3] %v18_v4 }

// kernel: reagr_forward.2
= control target key start
LH: loop header
LB: loop body
LE: loop exit
PB: predicated region body
PF: predicated region fallthrough
CT: control target
= control target key end

     0   :  { %vm22_vm0 = vcmask 261120   ;;  %vm160_vm1 = vcmask 15360   ;;  %s270_s0 = inlined_call_operand.vmem [shape: f32[16,32], index: 0, kind: input, shape index: {}]   ;;  %s271_s3 = inlined_call_operand.vmem [shape: f32[32,2], index: 3, kind: input, shape index: {}]   ;;  %s272_s1 = inlined_call_operand.vmem [shape: f32[1,32], index: 1, kind: input, shape index: {}]   ;;  %s273_s2 = inlined_call_operand.vmem [shape: f32[1,32], index: 2, kind: input, shape index: {}]   ;;  %s274_s4 = inlined_call_operand.vmem [shape: f32[1,2], index: 4, kind: input, shape index: {}]   ;;  %s275_s5 = inlined_call_operand.vmem [shape: f32[16,2], index: 5, kind: output, shape index: {}]  }
   0x1   :  { %v20_v0 = vld [vmem:[%s270_s0] sm:$0xff]  ;;  %v21_v1 = vld [vmem:[%s270_s0 + $0x8] sm:$0xff]  ;;  %v70_v16 = vld [vmem:[%s271_s3 + $0x10] sm:$0xff] }
   0x2   :  { %v23_v2 = vsel %vm22_vm0, %v20_v0, 0.0  ;;  %v26_v3 = vsel %vm22_vm0, %v21_v1, 0.0  ;;  %v68_v14 = vld [vmem:[%s271_s3] sm:$0xff]  ;;  %v69_v15 = vld [vmem:[%s271_s3 + $0x8] sm:$0xff]  ;;  %v71_v18 = vld [vmem:[%s271_s3 + $0x18] sm:$0xff] }
   0x3   :  { %24 = vadd.xlane.f32.xlu0 %v23_v2  ;;  %v189_v17 = vpack.c.bf16 %v69_v15, %v68_v14  ;;  %v193_v19 = vpack.c.bf16 %v71_v18, %v70_v16  ;;  %v167_v27 = vld [vmem:[%s272_s1] ss:$0 sm:$0xff] }
   0x4   :  { %v168_v29 = vld [vmem:[%s273_s2] ss:$0 sm:$0xff] }
   0x5   :  { %190 = vmatprep.subr.bf16.mxu0 %v189_v17  ;;  %v169_v36 = vld [vmem:[%s274_s4] ss:$0 sm:$0xff] }
   0x6   :  { %192 = vmatpush3.bf16.msra.mxu0 %v189_v17 }
   0x7   :  { %27 = vadd.xlane.f32.xlu0 %v26_v3  ;;  %194 = vmatprep.subr.bf16.mxu0 %v193_v19 }
   0xa   :  { %196 = vmatpush3.bf16.msra.mxu0 %v193_v19 }
  0x90   :  { %v25_v4 = vpop.xlane.xlu0 %24 }
  0x91   :  { %v30_v5 = vmul.f32 0.03125, %v25_v4 }
  0x93   :  { %v32_v6 = vsub.f32 %v20_v0, %v30_v5 }
  0x94   :  { %v28_v7 = vpop.xlane.xlu0 %27 }
  0x95   :  { %v31_v8 = vmul.f32 0.03125, %v28_v7  ;;  %v34_v9 = vmul.f32 %v32_v6, %v32_v6 }
  0x97   :  { %v33_v10 = vsub.f32 %v21_v1, %v31_v8  ;;  %v36_v11 = vsel %vm22_vm0, %v34_v9, 0.0 }
  0x98   :  { %37 = vadd.xlane.f32.xlu1 %v36_v11 }
  0x99   :  { %v35_v12 = vmul.f32 %v33_v10, %v33_v10 }
  0x9b   :  { %v39_v13 = vsel %vm22_vm0, %v35_v12, 0.0 }
  0x9c   :  { %40 = vadd.xlane.f32.xlu1 %v39_v13 }
 0x125   :  { %v38_v20 = vpop.xlane.xlu1 %37 }
 0x126   :  { %v42_v21 = vmul.f32 0.03125, %v38_v20 }
 0x128   :  { %v44_v22 = vadd.f32 1e-05, %v42_v21 }
 0x129   :  { %v41_v23 = vpop.xlane.xlu1 %40 }
 0x12a   :  { %197 = vrsqrt.f32 %v44_v22  ;;  %v43_v24 = vmul.f32 0.03125, %v41_v23 }
 0x12c   :  { %v45_v25 = vadd.f32 1e-05, %v43_v24 }
 0x12e   :  { %199 = vrsqrt.f32 %v45_v25 }
 0x134   :  { %v198_v26 = vpop.eup %197 }
 0x135   :  { %v48_v28 = vmul.f32 %v198_v26, %v32_v6 }
 0x137   :  { %v57_v30 = vmul.f32 %v167_v27, %v48_v28 }
 0x138   :  { %v200_v31 = vpop.eup %199 }
 0x139   :  { %v49_v32 = vmul.f32 %v200_v31, %v33_v10  ;;  %v66_v33 = vadd.f32 %v168_v29, %v57_v30 }
 0x13b   :  { %v58_v34 = vmul.f32 %v167_v27, %v49_v32  ;;  %186 = vmatprep.mubr.msk.f32.mxu0 %vm22_vm0, %v66_v33 }
 0x13d   :  { %v67_v35 = vadd.f32 %v168_v29, %v58_v34 }
 0x13f   :  { %187 = vmatmul.mubr.msk.f32.vlgmr.msra.gmra.mrb[0].mxu0 %vm22_vm0, %v67_v35 }
 0x212   :  { %v188_v37 = vpop.f32.mrb[0].mxu0 }
 0x213   :  { %v157_v38 = vadd.f32 %v188_v37, %v169_v36  ;;  %v151_v39 = vpop.f32.mrb[1].mxu0 }
 0x214   :  { %v152_v40 = vadd.f32 %v169_v36, %v151_v39 }
 0x215   :  { %162 = vst.msk [vmem:[%s275_s5 + $0x8] sm:$0xff] %vm160_vm1, %v157_v38 }
 0x216   :  { %161 = vst.msk [vmem:[%s275_s5] sm:$0xff] %vm160_vm1, %v152_v40 }

// kernel: reagr_forward.3
= control target key start
LH: loop header
LB: loop body
LE: loop exit
PB: predicated region body
PF: predicated region fallthrough
CT: control target
= control target key end

     0   :  { %s295_s0 = inlined_call_operand.vmem [shape: f32[2,8,32], index: 0, kind: input, shape index: {}]   ;;  %s296_s1 = inlined_call_operand.vmem [shape: f32[2,8,1], index: 1, kind: input, shape index: {}]   ;;  %s297_s2 = inlined_call_operand.vmem [shape: f32[32,2], index: 2, kind: input, shape index: {}]   ;;  %s298_s3 = inlined_call_operand.vmem [shape: f32[1,2], index: 3, kind: input, shape index: {}]   ;;  %s299_s4 = inlined_call_operand.hbm [shape: f32[2,2], index: 4, kind: output, shape index: {}]  }
   0x1   :  { %v20_v0 = vld [vmem:[%s296_s1] sm:$0xff]  ;;  %v21_v1 = vld [vmem:[%s296_s1 + $0x8] sm:$0xff] }
   0x2   :  { %9 = vsyncpa [#allocation3], 0  ;;  %v223_v2 = vmov 0   ;;  %v34_v3 = vsub.f32 1.0, %v20_v0  ;;  %v35_v4 = vsub.f32 1.0, %v21_v1  ;;  %v65_v7 = vld [vmem:[%s297_s2] sm:$0xff] }
   0x3   :  { %197 = vset.pattern.permute.xlu0 %v223_v2  ;;  %198 = vset.pattern.permute.xlu1 %v223_v2  ;;  %v66_v8 = vld [vmem:[%s297_s2 + $0x8] sm:$0xff]  ;;  %v224_v10 = vmov 0.0|0.0   ;;  %v67_v11 = vld [vmem:[%s297_s2 + $0x10] sm:$0xff]  ;;  %v68_v12 = vld [vmem:[%s297_s2 + $0x18] sm:$0xff]  ;;  %vm225_vm0 = vmmov 0   ;;  %v226_v14 = vmov 0.0  }
   0x4   :  { %24 = vperm.xlu0 %197, %v20_v0   ;;  %v36_v5 = vmul.f32 -1000000.0, %v34_v3  ;;  %v37_v6 = vmul.f32 -1000000.0, %v35_v4  ;;  %v187_v9 = vpack.c.bf16 %v66_v8, %v65_v7  ;;  %186 = vmatprep.subr.bf16.mxu0 %v224_v10  ;;  %v190_v13 = vpack.c.bf16 %v68_v12, %v67_v11  ;;  %v18_v15 = vld [vmem:[%s295_s0] sm:$0xff]  ;;  %v19_v18 = vld [vmem:[%s295_s0 + $0x8] sm:$0xff] }
   0x5   :  { %183 = vmatprep.mubr.msk.f32.mxu0 %vm225_vm0, %v226_v14  ;;  %vm50_vm1 = vcmask 261120   ;;  %vm78_vm2 = vcmask 1041409   ;;  %v168_v40 = vld [vmem:[%s298_s3] ss:$0 sm:$0xff]  ;;  %s227_s30 = smov [#allocation2]   ;;  %vm152_vm3 = vcmask 9216  }
   0x6   :  { %40 = vperm.xlu1 %198, %v36_v5   ;;  %188 = vmatpush3.bf16.msra.mxu0 %v187_v9  ;;  %s160_s5 = sshll.u32 %s227_s30, 4  ;;  %s161_s5 = int_to_ptr.vmem [resolvable:$true] %s160_s5 }
   0x7   :  { %189 = vmatprep.subr.bf16.mxu0 %v224_v10  ;;  %s199_s6 = scalar_lea.vmem %s161_s5, 32  ;;  %p204_p1 = scmp.lt.s32.totalorder %s161_s5, %s161_s5 }
   0x8   :  { %29 = vperm.xlu0 %197, %v21_v1   ;;  %p200_p0 = scmp.ne.s32.totalorder %s161_s5, %s199_s6  ;;  %p205_p2 = scmp.lt.s32.totalorder %s199_s6, %s199_s6 }
   0xa   :  { %45 = vperm.xlu1 %198, %v37_v6   ;;  %191 = vmatpush3.bf16.msra.mxu0 %v190_v13  ;;  %p206_p3 = por %p205_p2, %p204_p1 }
   0xc   :  { %p207_p4 = pnand %p206_p3, %p200_p0 }
  0x83   :  { %v25_v16 = vpop.permute.xlu0 %24 }
  0x84   :  { %v32_v17 = vmul.f32 %v25_v16, %v18_v15 }
  0x85   :  { %v41_v19 = vpop.permute.xlu1 %40 }
  0x86   :  { %v48_v20 = vadd.f32 %v41_v19, %v32_v17 }
  0x87   :  { %v30_v21 = vpop.permute.xlu0 %29 }
  0x88   :  { %v33_v22 = vmul.f32 %v30_v21, %v19_v18  ;;  %v51_v23 = vsel %vm50_vm1, %v48_v20, -inf }
  0x89   :  { %v52_v24 = vrot.slane %v51_v23, 4  ;;  %v46_v25 = vpop.permute.xlu1 %45 }
  0x8a   :  { %v49_v26 = vadd.f32 %v46_v25, %v33_v22 }
  0x8b   :  { %v53_v27 = vmax.f32 %v51_v23, %v52_v24 }
  0x8c   :  { %v58_v28 = vsel %vm50_vm1, %v49_v26, -inf }
  0x8d   :  { %v54_v29 = vrot.slane %v53_v27, 2  ;;  %v59_v30 = vrot.slane %v58_v28, 4 }
  0x8f   :  { %v55_v31 = vmax.f32 %v53_v27, %v54_v29  ;;  %v60_v32 = vmax.f32 %v58_v28, %v59_v30 }
  0x91   :  { %v61_v33 = vrot.slane %v60_v32, 2  ;;  %v56_v34 = vrot.slane %v55_v31, 1 }
  0x93   :  { %v62_v35 = vmax.f32 %v60_v32, %v61_v33  ;;  %v57_v37 = vmax.f32 %v55_v31, %v56_v34 }
  0x95   :  { %v63_v36 = vrot.slane %v62_v35, 1 }
  0x97   :  { %v64_v38 = vmax.f32 %v62_v35, %v63_v36 }
  0x99   :  { %v79_v39 = vsel %vm78_vm2, %v64_v38, %v57_v37 }
  0x9a   :  { %184 = vmatmul.mubr.msk.f32.vlgmr.msra.gmra.mrb[0].mxu0 %vm50_vm1, %v79_v39 }
 0x16d   :  { %v148_v41 = vpop.f32.mrb[0].mxu0 }
 0x16e   :  { %v149_v42 = vadd.f32 %v168_v40, %v148_v41  ;;  %v185_v43 = vpop.f32.mrb[1].mxu0 }
 0x170   :  { %153 = vst.msk [vmem:[#allocation2] sm:$0x3] %vm152_vm3, %v149_v42 }
 0x171   :  { %210 = shalt.err (!%p207_p4)
}
 0x172   :  { %s211_s9 = scalar_lea.hbm %s299_s4, 32 }
 0x173   :  { %p212_p5 = scmp.ne.s32.totalorder %s299_s4, %s211_s9  ;;  %p215_p6 = scmp.lt.u32.totalorder %s211_s9, %s299_s4 }
 0x175   :  { %p217_p7 = pnand %p215_p6, %p212_p5 }
 0x177   :  { %220 = shalt.err (!%p217_p7)
}
 0x178   :  { %163 = dma.vmem_to_hbm [thread:$0]  %s161_s5, 32, %s299_s4, [#allocation3]  }
 0x179   :  { %221 = dma.done.wait [#allocation3], 32  }
 0x17a   :  { %222 = vsyncadd [#allocation3], 4294967264 }
 0x17b   :  { %167 = vsyncpa [#allocation3], 1 }

</bundles_post_ra>
